<compile_context>
chip_gen: v7x
topology: tpu7x:2x2x1
jax: 0.10.0
libtpu: 0.0.40
codegen_flags: <defaults>
</compile_context>

<pallas_src>
import jax
import jax.numpy as jnp
from jax.experimental import pallas as pl
from jax.experimental.pallas import tpu as pltpu


LANE_COLS = 512   # lane-dense width: large multiple of 128
TILE_ROWS = 512   # rows per grid step (multiple of 8)


def _round_up(x: int, m: int) -> int:
    return ((x + m - 1) // m) * m


def _exp_clamp_kernel(x_ref, o_ref):
    # Elementwise hot path, all in VMEM.
    # Upcast to f32 for exp/clamp (v5e has no bf16 EUP/VPU), cast back on store.
    x = x_ref[...].astype(jnp.float32)
    y = jnp.maximum(jnp.exp(x), jnp.float32(1e-4))
    o_ref[...] = y.astype(o_ref.dtype)


def exp_clamp(x: jax.Array) -> jax.Array:
    """clamp(exp(x), min=1e-4), matching torch.exp + torch.clamp(min=0.0001)."""
    orig_shape = x.shape
    orig_dtype = x.dtype
    n = int(x.size)

    # --- lane-dense 2-D slab layout ------------------------------------------
    rows = pl.cdiv(n, LANE_COLS)
    # Tile rows: up to TILE_ROWS, sublane-aligned (multiple of 8).
    tm = min(TILE_ROWS, _round_up(rows, 8))
    rows_padded = _round_up(rows, tm)
    padded_n = rows_padded * LANE_COLS

    x_flat = x.reshape(-1)
    if padded_n != n:
        # Zero padding is safe: exp(0)=1 >= 1e-4; padded region is discarded.
        x_flat = jnp.pad(x_flat, (0, padded_n - n))
    x2d = x_flat.reshape(rows_padded, LANE_COLS)

    num_blocks = rows_padded // tm
    itemsize = jnp.dtype(orig_dtype).itemsize

    out2d = pl.pallas_call(
        _exp_clamp_kernel,
        out_shape=jax.ShapeDtypeStruct((rows_padded, LANE_COLS), orig_dtype),
        grid=(num_blocks,),
        in_specs=[pl.BlockSpec((tm, LANE_COLS), lambda i: (i, 0))],
        out_specs=pl.BlockSpec((tm, LANE_COLS), lambda i: (i, 0)),
        compiler_params=pltpu.CompilerParams(
            # Independent row blocks -> shard across TensorCores (v7x megacore).
            dimension_semantics=("parallel",),
        ),
        cost_estimate=pl.CostEstimate(
            flops=padded_n,                       # the clamp (max) per element
            transcendentals=padded_n,             # exp per element
            bytes_accessed=2 * padded_n * itemsize,
        ),
    )(x2d)

    return out2d.reshape(-1)[:n].reshape(orig_shape)


if __name__ == "__main__":
    key = jax.random.PRNGKey(0)

    # Small NCHW input consistent with a typical conv-net activation.
    x = jax.random.normal(key, (2, 4, 16, 16), dtype=jnp.float32) * 5.0
    out = exp_clamp(x)
    jax.block_until_ready(out)
    ref = jnp.maximum(jnp.exp(x), 0.0001)
    assert out.shape == x.shape and out.dtype == x.dtype
    assert jnp.allclose(out, ref, rtol=1e-6, atol=1e-6)

    # Second check: non-multiple size -> exercises padding + multi-block grid.
    k2 = jax.random.PRNGKey(1)
    x2 = jax.random.normal(k2, (600_000,), dtype=jnp.float32) * 3.0
    out2 = exp_clamp(x2)
    jax.block_until_ready(out2)
    ref2 = jnp.maximum(jnp.exp(x2), 0.0001)
    assert out2.shape == x2.shape and out2.dtype == x2.dtype
    assert jnp.allclose(out2, ref2, rtol=1e-6, atol=1e-6)

    print("KERNEL_OK")
</pallas_src>

<mosaic_0001>
module attributes {stable_mosaic.version = 11 : i64} {
  func.func @_exp_clamp_kernel(%arg0: i32, %arg1: memref<8x512xf32, #tpu.memory_space<vmem>>, %arg2: memref<8x512xf32, #tpu.memory_space<vmem>>) attributes {dimension_semantics = [#tpu.dimension_semantics<parallel>], iteration_bounds = array<i64: 1>, scalar_prefetch = 0 : i64, scratch_operands = 0 : i64, tpu.core_type = #tpu.core_type<tc>, window_params = [{transform_indices = @transform_0, window_bounds = array<i64: 8, 512>}, {transform_indices = @transform_1, window_bounds = array<i64: 8, 512>}]} {
    %c0 = arith.constant 0 : index
    %c0_0 = arith.constant 0 : index
    %0 = vector.load %arg1[%c0, %c0_0] : memref<8x512xf32, #tpu.memory_space<vmem>>, vector<8x512xf32>
    %1 = math.exp %0 : vector<8x512xf32>
    %cst = arith.constant 9.99999974E-5 : f32
    %2 = vector.broadcast %cst : f32 to vector<8x512xf32>
    %3 = arith.maximumf %1, %2 : vector<8x512xf32>
    %c0_1 = arith.constant 0 : index
    %c0_2 = arith.constant 0 : index
    %4 = vector.load %arg2[%c0_1, %c0_2] : memref<8x512xf32, #tpu.memory_space<vmem>>, vector<8x512xf32>
    tpu.vector_store %arg2[%c0_1, %c0_2], %3 {strides = array<i32>} : memref<8x512xf32, #tpu.memory_space<vmem>>, vector<8x512xf32>,
    return
  }
  func.func @transform_0(%arg0: i32) -> (i32, i32) {
    %c0_i32 = arith.constant 0 : i32
    %c0_i32_0 = arith.constant 0 : i32
    return %arg0, %c0_i32 : i32, i32
  }
  func.func @transform_1(%arg0: i32) -> (i32, i32) {
    %c0_i32 = arith.constant 0 : i32
    %c0_i32_0 = arith.constant 0 : i32
    return %arg0, %c0_i32 : i32, i32
  }
}

</mosaic_0001>

<bundles_post_ra>
// kernel: tpu_custom_call.1
= control target key start
LH: loop header
LB: loop body
LE: loop exit
PB: predicated region body
PF: predicated region fallthrough
CT: control target
= control target key end

     0   :  { %6 = vsyncpa [#allocation3], 0  ;;  %s150_s0 = inlined_call_operand.hbm [shape: f32[8,512], index: 0, kind: input, shape index: {}]   ;;  %s151_s1 = inlined_call_operand.hbm [shape: f32[8,512], index: 1, kind: output, shape index: {}]  }
   0x1   :  { %7 = vsyncpa [#allocation4], 0  ;;  %s114_s6 = smov [#allocation2]   ;;  %s66_s10 = scalar_lea.hbm %s150_s0, 512 }
   0x2   :  { %s14_s7 = sshll.u32 %s114_s6, 4  ;;  %p67_p0 = scmp.ne.s32.totalorder %s150_s0, %s66_s10  ;;  %s15_s7 = int_to_ptr.vmem [resolvable:$true] %s14_s7 }
   0x3   :  { %p70_p1 = scmp.lt.u32.totalorder %s66_s10, %s150_s0 }
   0x5   :  { %p72_p2 = pnand %p70_p1, %p67_p0 }
   0x7   :  { %75 = shalt.err (!%p72_p2)
}
   0x8   :  { %s76_s15 = scalar_lea.vmem %s15_s7, 512  ;;  %p81_p4 = scmp.lt.s32.totalorder %s15_s7, %s15_s7 }
   0x9   :  { %p77_p3 = scmp.ne.s32.totalorder %s15_s7, %s76_s15  ;;  %p82_p5 = scmp.lt.s32.totalorder %s76_s15, %s76_s15 }
   0xb   :  { %p83_p6 = por %p82_p5, %p81_p4 }
   0xd   :  { %p84_p7 = pnand %p83_p6, %p77_p3 }
   0xf   :  { %87 = shalt.err (!%p84_p7)
}
  0x10   :  { %17 = dma.hbm_to_vmem [thread:$0]  %s150_s0, 512, %s15_s7, [#allocation3]  }
  0x11   :  { %110 = dma.done.wait [#allocation3], 512  }
  0x12   :  { %111 = vsyncadd [#allocation3], 4294966784  ;;  %v21_v0 = vld [vmem:[#allocation2] sm:$0xff]  ;;  %v22_v1 = vld [vmem:[#allocation2 + $0x8] sm:$0xff]  ;;  %s115_s18 = smov [#allocation5]  }
  0x13   :  { %v23_v2 = vld [vmem:[#allocation2 + $0x10] sm:$0xff]  ;;  %v25_v3 = vmul.f32 1.442695, %v21_v0  ;;  %v27_v4 = vmul.f32 1.442695, %v22_v1  ;;  %v24_v6 = vld [vmem:[#allocation2 + $0x18] sm:$0xff] }
  0x14   :  { %v29_v5 = vmul.f32 1.442695, %v23_v2  ;;  %v31_v7 = vmul.f32 1.442695, %v24_v6  ;;  %s47_s19 = sshll.u32 %s115_s18, 4  ;;  %s48_s19 = int_to_ptr.vmem [resolvable:$true] %s47_s19 }
  0x15   :  { %58 = vpow2.f32 %v25_v3  ;;  %s88_s0 = scalar_lea.vmem %s48_s19, 512  ;;  %p93_p9 = scmp.lt.s32.totalorder %s48_s19, %s48_s19 }
  0x16   :  { %60 = vpow2.f32 %v27_v4  ;;  %p89_p8 = scmp.ne.s32.totalorder %s48_s19, %s88_s0  ;;  %p94_p10 = scmp.lt.s32.totalorder %s88_s0, %s88_s0 }
  0x17   :  { %62 = vpow2.f32 %v29_v5 }
  0x18   :  { %64 = vpow2.f32 %v31_v7  ;;  %p95_p11 = por %p94_p10, %p93_p9 }
  0x1a   :  { %p96_p12 = pnand %p95_p11, %p89_p8 }
  0x1f   :  { %v59_v8 = vpop.eup %58 }
  0x20   :  { %v61_v9 = vpop.eup %60  ;;  %v33_v10 = vmax.f32 %v59_v8, 0.0001 }
  0x21   :  { %v63_v11 = vpop.eup %62  ;;  %v34_v12 = vmax.f32 %v61_v9, 0.0001 }
  0x22   :  { %v65_v13 = vpop.eup %64  ;;  %37 = vst [vmem:[#allocation5] sm:$0xff] %v33_v10  ;;  %v35_v14 = vmax.f32 %v63_v11, 0.0001 }
  0x23   :  { %38 = vst [vmem:[#allocation5 + $0x8] sm:$0xff] %v34_v12  ;;  %v36_v15 = vmax.f32 %v65_v13, 0.0001 }
  0x24   :  { %39 = vst [vmem:[#allocation5 + $0x10] sm:$0xff] %v35_v14 }
  0x25   :  { %40 = vst [vmem:[#allocation5 + $0x18] sm:$0xff] %v36_v15 }
  0x26   :  { %99 = shalt.err (!%p96_p12)
}
  0x27   :  { %s100_s22 = scalar_lea.hbm %s151_s1, 512 }
  0x28   :  { %p101_p13 = scmp.ne.s32.totalorder %s151_s1, %s100_s22  ;;  %p104_p0 = scmp.lt.u32.totalorder %s100_s22, %s151_s1 }
  0x2a   :  { %p106_p1 = pnand %p104_p0, %p101_p13 }
  0x2c   :  { %109 = shalt.err (!%p106_p1)
}
  0x2d   :  { %50 = dma.vmem_to_hbm [thread:$0]  %s48_s19, 512, %s151_s1, [#allocation4]  }
  0x2e   :  { %112 = dma.done.wait [#allocation4], 512  }
  0x2f   :  { %113 = vsyncadd [#allocation4], 4294966784 }
  0x30   :  { %54 = vsyncpa [#allocation3], 1 }
  0x31   :  { %55 = vsyncpa [#allocation4], 1 }

</bundles_post_ra>
